<compile_context>
chip_gen: v6e
topology: v6e:2x2x1
jax: 0.10.0
libtpu: 0.0.40
codegen_flags: <defaults>
</compile_context>

<pallas_src>
import functools
import math

import jax
import jax.numpy as jnp
from jax.experimental import pallas as pl
from jax.experimental.pallas import tpu as pltpu


def _masked_sq_err_sum(dot, n1s, n2s, lbl, orig_row, batch):
    """Masked sum of (sim - label)^2 for per-row dot / squared-norm arrays."""
    eps = jnp.float32(1e-8)
    # Separate sqrts (not sqrt(n1s * n2s)) so very large norms don't overflow.
    denom = jnp.maximum(jnp.sqrt(n1s) * jnp.sqrt(n2s), eps)
    sim = (dot / denom + 1.0) * 0.5
    diff = sim - lbl
    d2 = jnp.where(orig_row < batch, diff * diff, jnp.float32(0.0))
    return jnp.sum(d2, keepdims=True)            # (1, 1) float32


def _similarity_loss_kernel(o1_ref, o2_ref, lbl_ref, part_ref, acc_ref, *,
                            tiles_per_core: int, tile_b: int, group: int,
                            seg_d: int, batch: int, low_prec: bool):
    """One (tile_b, group*seg_d) batch tile of the streaming loss reduction."""
    c = pl.program_id(0)          # core axis (size 1 unless num_cores > 1)
    i = pl.program_id(1)          # batch-tile reduction axis ("arbitrary")

    @pl.when(i == 0)
    def _():
        acc_ref[...] = jnp.zeros_like(acc_ref)

    lbl = lbl_ref[...].astype(jnp.float32)        # (TB, g)
    bi = c * tiles_per_core + i                   # UNclamped logical tile idx
    row0 = bi * tile_b                            # first packed row of tile

    if low_prec:
        # bf16 inputs: keep products in bf16 and reduce on the MXU with a
        # block-diagonal segment-sum matrix (f32 accumulate).  Column j sums
        # lanes [j*seg_d, (j+1)*seg_d); with group == 1 it is ones((D, 1)).
        o1 = o1_ref[...]
        o2 = o2_ref[...]
        w = group * seg_d
        ri = jax.lax.broadcasted_iota(jnp.int32, (w, group), 0)
        ci = jax.lax.broadcasted_iota(jnp.int32, (w, group), 1)
        seg_sum = ((ri // seg_d) == ci).astype(o1.dtype)
        dot = jnp.dot(o1 * o2, seg_sum, preferred_element_type=jnp.float32)
        n1s = jnp.dot(o1 * o1, seg_sum, preferred_element_type=jnp.float32)
        n2s = jnp.dot(o2 * o2, seg_sum, preferred_element_type=jnp.float32)
        packed = row0 + jax.lax.broadcasted_iota(jnp.int32, (tile_b, group), 0)
        col = jax.lax.broadcasted_iota(jnp.int32, (tile_b, group), 1)
        orig = packed * group + col
        acc_ref[...] += _masked_sq_err_sum(dot, n1s, n2s, lbl, orig, batch)
    else:
        # f32 inputs: exact f32 per-segment VPU/XLU reductions (no precision
        # change vs the reference).  `group` is small (<= 8), unrolled.
        packed = row0 + jax.lax.broadcasted_iota(jnp.int32, (tile_b, 1), 0)
        total = jnp.zeros((1, 1), jnp.float32)
        for j in range(group):
            sl = slice(j * seg_d, (j + 1) * seg_d)
            a = o1_ref[:, sl].astype(jnp.float32)
            b = o2_ref[:, sl].astype(jnp.float32)
            dot = jnp.sum(a * b, axis=-1, keepdims=True)
            n1s = jnp.sum(a * a, axis=-1, keepdims=True)
            n2s = jnp.sum(b * b, axis=-1, keepdims=True)
            orig = packed * group + j
            total = total + _masked_sq_err_sum(dot, n1s, n2s,
                                               lbl[:, j:j + 1], orig, batch)
        acc_ref[...] += total

    @pl.when(i == tiles_per_core - 1)
    def _():
        part_ref[...] = acc_ref[...]


def similarity_loss(output1: jax.Array, output2: jax.Array, label: jax.Array,
                    *, num_cores: int = 1, max_tile_b: int = 1024) -> jax.Array:
    """Pallas TPU implementation of SimilarityLoss.forward.

    output1, output2: (B, D) float arrays
    label:            (B,)   float array
    returns:          scalar float32 loss

    num_cores=1 is right for v5e/v6e (one TensorCore).  num_cores=2 enables a
    core-parallel leading axis for v7x.
    """
    assert output1.shape == output2.shape and output1.ndim == 2
    B, D = output1.shape
    label = label.reshape(-1)
    assert label.shape[0] == B

    i1 = jnp.dtype(output1.dtype).itemsize
    i2 = jnp.dtype(output2.dtype).itemsize
    sublane = {4: 8, 2: 16, 1: 32}.get(min(i1, i2), 8)
    low_prec = (output1.dtype == jnp.bfloat16 and output2.dtype == jnp.bfloat16)

    # Lane packing for narrow feature dims: pack `group` rows per vreg row so
    # small D (e.g. the module's D=32) does not waste 3/4 of every lane / DMA.
    # gcd keeps B exactly divisible -> no padding of the big inputs, ever.
    group = 1
    if D < 128:
        group = math.gcd(B, min(8, max(1, 128 // D)))
    w = group * D
    bp = B // group                                   # packed rows (exact)

    # Generation-aware VMEM budget: ~3/8 of VMEM for the 2x double-buffered
    # inputs (24 MiB on v7x's 64 MiB per TC, 48 MiB on v5e/v6e's 128 MiB).
    vmem_cap = 64 * 1024 * 1024
    try:
        info = pltpu.get_tpu_info()
        vmem_cap = int(getattr(info, "vmem_capacity_bytes", vmem_cap)) or vmem_cap
    except Exception:
        pass
    budget = (vmem_cap * 3) // 8
    vmem_limit = (vmem_cap * 3) // 4

    bytes_per_row = 2 * w * (i1 + i2) + 4 * group * 4     # 2-deep pipeline
    tile_b = min(max_tile_b, max(sublane, budget // bytes_per_row))
    if bp <= tile_b:
        tile_b = bp                                  # single full-extent block
    else:
        tile_b = max(sublane, (tile_b // sublane) * sublane)
    num_tiles = (bp + tile_b - 1) // tile_b
    tiles_per_core = (num_tiles + num_cores - 1) // num_cores

    # Free reshapes (contiguous rows); only the tiny label array is cast.
    o1 = output1.reshape(bp, w)
    o2 = output2.reshape(bp, w)
    lbl = label.astype(jnp.float32).reshape(bp, group)

    kernel = functools.partial(
        _similarity_loss_kernel,
        tiles_per_core=tiles_per_core, tile_b=tile_b, group=group, seg_d=D,
        batch=B, low_prec=low_prec)

    def in_map(c, i):
        # Clamp surplus tiles (num_cores rounding) onto the last valid block;
        # the kernel masks with the unclamped index, so they contribute 0.
        bi = c * tiles_per_core + i
        return (jnp.minimum(bi, num_tiles - 1), 0)

    if num_cores > 1:
        dim_sem = (pltpu.CORE_PARALLEL, pltpu.ARBITRARY)
    else:
        dim_sem = (pltpu.ARBITRARY, pltpu.ARBITRARY)

    partials = pl.pallas_call(
        kernel,
        out_shape=jax.ShapeDtypeStruct((num_cores, 1, 1), jnp.float32),
        grid_spec=pltpu.PrefetchScalarGridSpec(
            num_scalar_prefetch=0,
            grid=(num_cores, tiles_per_core),
            in_specs=[
                pl.BlockSpec((tile_b, w), in_map),       # default 2-deep pipe
                pl.BlockSpec((tile_b, w), in_map),
                pl.BlockSpec((tile_b, group), in_map),
            ],
            # Leading dim squeezed; trailing (1,1) equals the full array dims.
            out_specs=pl.BlockSpec((None, 1, 1), lambda c, i: (c, 0, 0)),
            scratch_shapes=[pltpu.VMEM((1, 1), jnp.float32)],
        ),
        compiler_params=pltpu.CompilerParams(
            dimension_semantics=dim_sem,
            vmem_limit_bytes=int(vmem_limit),
        ),
    )(o1, o2, lbl)

    # Divide by the *true* batch size (masked rows contributed exactly zero).
    return jnp.sum(partials) / jnp.float32(B)


def _reference(output1, output2, label):
    o1 = output1.astype(jnp.float32)
    o2 = output2.astype(jnp.float32)
    dot = jnp.sum(o1 * o2, axis=1)
    n1 = jnp.linalg.norm(o1, axis=1)
    n2 = jnp.linalg.norm(o2, axis=1)
    cos = dot / jnp.maximum(n1 * n2, 1e-8)
    sim = (cos + 1.0) / 2.0
    return jnp.mean((sim - label.astype(jnp.float32)) ** 2)


if __name__ == "__main__":
    key = jax.random.PRNGKey(0)
    ks = jax.random.split(key, 9)

    # Primary small case consistent with the module: batch=8, hidden=32.
    # Exercises the lane-packed (group=4) f32 path, single tile.
    B, D = 8, 32
    out1 = jax.random.normal(ks[0], (B, D), dtype=jnp.float32)
    out2 = jax.random.normal(ks[1], (B, D), dtype=jnp.float32)
    lab = jax.random.uniform(ks[2], (B,), dtype=jnp.float32)
    loss = jax.block_until_ready(similarity_loss(out1, out2, lab))
    ref = _reference(out1, out2, lab)
    assert jnp.allclose(loss, ref, atol=2e-6, rtol=1e-4), (loss, ref)

    # Ragged batch with multi-tile accumulation + an overhanging last tile
    # (no padding of the inputs; masked rows contribute 0).
    B2, D2 = 300, 160
    a = jax.random.normal(ks[3], (B2, D2), dtype=jnp.float32)
    b = jax.random.normal(ks[4], (B2, D2), dtype=jnp.float32)
    l2 = jax.random.uniform(ks[5], (B2,), dtype=jnp.float32)
    loss2 = jax.block_until_ready(similarity_loss(a, b, l2, max_tile_b=64))
    ref2 = _reference(a, b, l2)
    assert jnp.allclose(loss2, ref2, atol=2e-6, rtol=1e-4), (loss2, ref2)

    # bf16 smoke test: exercises the MXU block-diagonal segment-sum path
    # (bf16 products, f32 accumulate), loose tolerance for bf16 rounding.
    B3, D3 = 16, 32
    a3 = jax.random.normal(ks[6], (B3, D3), dtype=jnp.bfloat16)
    b3 = jax.random.normal(ks[7], (B3, D3), dtype=jnp.bfloat16)
    l3 = jax.random.uniform(ks[8], (B3,), dtype=jnp.float32)
    loss3 = jax.block_until_ready(similarity_loss(a3, b3, l3))
    ref3 = _reference(a3, b3, l3)
    assert jnp.isfinite(loss3)
    assert jnp.allclose(loss3, ref3, atol=2e-2), (loss3, ref3)

    print("KERNEL_OK")
</pallas_src>

<mosaic_0001>
module attributes {stable_mosaic.version = 11 : i64} {
  func.func @_similarity_loss_kernel(%arg0: i32, %arg1: i32, %arg2: memref<2x128xf32, #tpu.memory_space<vmem>>, %arg3: memref<2x128xf32, #tpu.memory_space<vmem>>, %arg4: memref<2x4xf32, #tpu.memory_space<vmem>>, %arg5: memref<1x1x1xf32, #tpu.memory_space<vmem>>, %arg6: memref<1x1xf32, #tpu.memory_space<vmem>>) attributes {dimension_semantics = [#tpu.dimension_semantics<arbitrary>, #tpu.dimension_semantics<arbitrary>], iteration_bounds = array<i64: 1, 1>, scalar_prefetch = 0 : i64, scratch_operands = 1 : i64, tpu.core_type = #tpu.core_type<tc>, window_params = [{transform_indices = @transform_0, window_bounds = array<i64: 2, 128>}, {transform_indices = @transform_1, window_bounds = array<i64: 2, 128>}, {transform_indices = @transform_2, window_bounds = array<i64: 2, 4>}, {transform_indices = @transform_3, window_bounds = array<i64: 1, 1, 1>}]} {
    %c0_i32 = arith.constant 0 : i32
    %0 = arith.cmpi eq, %arg1, %c0_i32 : i32
    %1 = arith.extui %0 : i1 to i32
    %c0_i32_0 = arith.constant 0 : i32
    %2 = arith.cmpi ne, %1, %c0_i32_0 : i32
    scf.if %2 {
      %cst_62 = arith.constant 0.000000e+00 : f32
      %169 = vector.broadcast %cst_62 : f32 to vector<1x1xf32>
      %c0_63 = arith.constant 0 : index
      %c0_64 = arith.constant 0 : index
      %170 = vector.load %arg6[%c0_63, %c0_64] : memref<1x1xf32, #tpu.memory_space<vmem>>, vector<1x1xf32>
      tpu.vector_store %arg6[%c0_63, %c0_64], %169 {strides = array<i32>} : memref<1x1xf32, #tpu.memory_space<vmem>>, vector<1x1xf32>,
    } else {
    }
    %c0 = arith.constant 0 : index
    %c0_1 = arith.constant 0 : index
    %3 = vector.load %arg4[%c0, %c0_1] : memref<2x4xf32, #tpu.memory_space<vmem>>, vector<2x4xf32>
    %c1_i32 = arith.constant 1 : i32
    %4 = arith.muli %arg0, %c1_i32 : i32
    %5 = arith.addi %4, %arg1 : i32
    %c2_i32 = arith.constant 2 : i32
    %6 = arith.muli %5, %c2_i32 : i32
    %7 = tpu.iota {dimensions = array<i32: 0>} : vector<2x1xi32>
    %8 = vector.broadcast %6 : i32 to vector<2x1xi32>
    %9 = arith.addi %8, %7 : vector<2x1xi32>
    %cst = arith.constant 0.000000e+00 : f32
    %10 = vector.broadcast %cst : f32 to vector<1x1xf32>
    %c0_2 = arith.constant 0 : index
    %c0_3 = arith.constant 0 : index
    %11 = vector.load %arg2[%c0_2, %c0_3] : memref<2x128xf32, #tpu.memory_space<vmem>>, vector<2x32xf32>
    %c0_4 = arith.constant 0 : index
    %c0_5 = arith.constant 0 : index
    %12 = vector.load %arg3[%c0_4, %c0_5] : memref<2x128xf32, #tpu.memory_space<vmem>>, vector<2x32xf32>
    %13 = arith.mulf %11, %12 : vector<2x32xf32>
    %cst_6 = arith.constant dense<0.000000e+00> : vector<2xf32>
    %14 = vector.multi_reduction <add>, %13, %cst_6 [1] : vector<2x32xf32> to vector<2xf32>
    %15 = vector.shape_cast %14 : vector<2xf32> to vector<2x1xf32>
    %16 = arith.mulf %11, %11 : vector<2x32xf32>
    %cst_7 = arith.constant dense<0.000000e+00> : vector<2xf32>
    %17 = vector.multi_reduction <add>, %16, %cst_7 [1] : vector<2x32xf32> to vector<2xf32>
    %18 = vector.shape_cast %17 : vector<2xf32> to vector<2x1xf32>
    %19 = arith.mulf %12, %12 : vector<2x32xf32>
    %cst_8 = arith.constant dense<0.000000e+00> : vector<2xf32>
    %20 = vector.multi_reduction <add>, %19, %cst_8 [1] : vector<2x32xf32> to vector<2xf32>
    %21 = vector.shape_cast %20 : vector<2xf32> to vector<2x1xf32>
    %c4_i32 = arith.constant 4 : i32
    %22 = vector.broadcast %c4_i32 : i32 to vector<2x1xi32>
    %23 = arith.muli %9, %22 : vector<2x1xi32>
    %c0_i32_9 = arith.constant 0 : i32
    %24 = vector.broadcast %c0_i32_9 : i32 to vector<2x1xi32>
    %25 = arith.addi %23, %24 : vector<2x1xi32>
    %26 = vector.extract_strided_slice %3 {offsets = [0, 0], sizes = [2, 1], strides = [1, 1]} : vector<2x4xf32> to vector<2x1xf32>
    %27 = math.sqrt %18 : vector<2x1xf32>
    %28 = math.sqrt %21 : vector<2x1xf32>
    %29 = arith.mulf %27, %28 : vector<2x1xf32>
    %cst_10 = arith.constant 9.99999993E-9 : f32
    %30 = vector.broadcast %cst_10 : f32 to vector<2x1xf32>
    %31 = arith.maximumf %29, %30 : vector<2x1xf32>
    %32 = arith.divf %15, %31 : vector<2x1xf32>
    %cst_11 = arith.constant 1.000000e+00 : f32
    %33 = vector.broadcast %cst_11 : f32 to vector<2x1xf32>
    %34 = arith.addf %32, %33 : vector<2x1xf32>
    %cst_12 = arith.constant 5.000000e-01 : f32
    %35 = vector.broadcast %cst_12 : f32 to vector<2x1xf32>
    %36 = arith.mulf %34, %35 : vector<2x1xf32>
    %37 = arith.subf %36, %26 : vector<2x1xf32>
    %c8_i32 = arith.constant 8 : i32
    %38 = vector.broadcast %c8_i32 : i32 to vector<2x1xi32>
    %39 = arith.cmpi slt, %25, %38 : vector<2x1xi32>
    %40 = arith.mulf %37, %37 : vector<2x1xf32>
    %cst_13 = arith.constant 0.000000e+00 : f32
    %41 = vector.broadcast %cst_13 : f32 to vector<2x1xf32>
    %42 = arith.select %39, %40, %41 : vector<2x1xi1>, vector<2x1xf32>
    %43 = vector.shape_cast %42 : vector<2x1xf32> to vector<1x2x1xf32>
    %cst_14 = arith.constant dense<0.000000e+00> : vector<1xf32>
    %44 = vector.multi_reduction <add>, %43, %cst_14 [1, 2] : vector<1x2x1xf32> to vector<1xf32>
    %45 = vector.shape_cast %44 : vector<1xf32> to vector<1x1x1xf32>
    %46 = vector.extract %45[0, 0, 0] : f32 from vector<1x1x1xf32>
    %47 = vector.broadcast %46 : f32 to vector<1x1xf32>
    %48 = arith.addf %10, %47 : vector<1x1xf32>
    %c0_15 = arith.constant 0 : index
    %c32 = arith.constant 32 : index
    %49 = vector.load %arg2[%c0_15, %c32] : memref<2x128xf32, #tpu.memory_space<vmem>>, vector<2x32xf32>
    %c0_16 = arith.constant 0 : index
    %c32_17 = arith.constant 32 : index
    %50 = vector.load %arg3[%c0_16, %c32_17] : memref<2x128xf32, #tpu.memory_space<vmem>>, vector<2x32xf32>
    %51 = arith.mulf %49, %50 : vector<2x32xf32>
    %cst_18 = arith.constant dense<0.000000e+00> : vector<2xf32>
    %52 = vector.multi_reduction <add>, %51, %cst_18 [1] : vector<2x32xf32> to vector<2xf32>
    %53 = vector.shape_cast %52 : vector<2xf32> to vector<2x1xf32>
    %54 = arith.mulf %49, %49 : vector<2x32xf32>
    %cst_19 = arith.constant dense<0.000000e+00> : vector<2xf32>
    %55 = vector.multi_reduction <add>, %54, %cst_19 [1] : vector<2x32xf32> to vector<2xf32>
    %56 = vector.shape_cast %55 : vector<2xf32> to vector<2x1xf32>
    %57 = arith.mulf %50, %50 : vector<2x32xf32>
    %cst_20 = arith.constant dense<0.000000e+00> : vector<2xf32>
    %58 = vector.multi_reduction <add>, %57, %cst_20 [1] : vector<2x32xf32> to vector<2xf32>
    %59 = vector.shape_cast %58 : vector<2xf32> to vector<2x1xf32>
    %c4_i32_21 = arith.constant 4 : i32
    %60 = vector.broadcast %c4_i32_21 : i32 to vector<2x1xi32>
    %61 = arith.muli %9, %60 : vector<2x1xi32>
    %c1_i32_22 = arith.constant 1 : i32
    %62 = vector.broadcast %c1_i32_22 : i32 to vector<2x1xi32>
    %63 = arith.addi %61, %62 : vector<2x1xi32>
    %64 = vector.extract_strided_slice %3 {offsets = [0, 1], sizes = [2, 1], strides = [1, 1]} : vector<2x4xf32> to vector<2x1xf32>
    %65 = math.sqrt %56 : vector<2x1xf32>
    %66 = math.sqrt %59 : vector<2x1xf32>
    %67 = arith.mulf %65, %66 : vector<2x1xf32>
    %cst_23 = arith.constant 9.99999993E-9 : f32
    %68 = vector.broadcast %cst_23 : f32 to vector<2x1xf32>
    %69 = arith.maximumf %67, %68 : vector<2x1xf32>
    %70 = arith.divf %53, %69 : vector<2x1xf32>
    %cst_24 = arith.constant 1.000000e+00 : f32
    %71 = vector.broadcast %cst_24 : f32 to vector<2x1xf32>
    %72 = arith.addf %70, %71 : vector<2x1xf32>
    %cst_25 = arith.constant 5.000000e-01 : f32
    %73 = vector.broadcast %cst_25 : f32 to vector<2x1xf32>
    %74 = arith.mulf %72, %73 : vector<2x1xf32>
    %75 = arith.subf %74, %64 : vector<2x1xf32>
    %c8_i32_26 = arith.constant 8 : i32
    %76 = vector.broadcast %c8_i32_26 : i32 to vector<2x1xi32>
    %77 = arith.cmpi slt, %63, %76 : vector<2x1xi32>
    %78 = arith.mulf %75, %75 : vector<2x1xf32>
    %cst_27 = arith.constant 0.000000e+00 : f32
    %79 = vector.broadcast %cst_27 : f32 to vector<2x1xf32>
    %80 = arith.select %77, %78, %79 : vector<2x1xi1>, vector<2x1xf32>
    %81 = vector.shape_cast %80 : vector<2x1xf32> to vector<1x2x1xf32>
    %cst_28 = arith.constant dense<0.000000e+00> : vector<1xf32>
    %82 = vector.multi_reduction <add>, %81, %cst_28 [1, 2] : vector<1x2x1xf32> to vector<1xf32>
    %83 = vector.shape_cast %82 : vector<1xf32> to vector<1x1x1xf32>
    %84 = vector.extract %83[0, 0, 0] : f32 from vector<1x1x1xf32>
    %85 = vector.broadcast %84 : f32 to vector<1x1xf32>
    %86 = arith.addf %48, %85 : vector<1x1xf32>
    %c0_29 = arith.constant 0 : index
    %c64 = arith.constant 64 : index
    %87 = vector.load %arg2[%c0_29, %c64] : memref<2x128xf32, #tpu.memory_space<vmem>>, vector<2x32xf32>
    %c0_30 = arith.constant 0 : index
    %c64_31 = arith.constant 64 : index
    %88 = vector.load %arg3[%c0_30, %c64_31] : memref<2x128xf32, #tpu.memory_space<vmem>>, vector<2x32xf32>
    %89 = arith.mulf %87, %88 : vector<2x32xf32>
    %cst_32 = arith.constant dense<0.000000e+00> : vector<2xf32>
    %90 = vector.multi_reduction <add>, %89, %cst_32 [1] : vector<2x32xf32> to vector<2xf32>
    %91 = vector.shape_cast %90 : vector<2xf32> to vector<2x1xf32>
    %92 = arith.mulf %87, %87 : vector<2x32xf32>
    %cst_33 = arith.constant dense<0.000000e+00> : vector<2xf32>
    %93 = vector.multi_reduction <add>, %92, %cst_33 [1] : vector<2x32xf32> to vector<2xf32>
    %94 = vector.shape_cast %93 : vector<2xf32> to vector<2x1xf32>
    %95 = arith.mulf %88, %88 : vector<2x32xf32>
    %cst_34 = arith.constant dense<0.000000e+00> : vector<2xf32>
    %96 = vector.multi_reduction <add>, %95, %cst_34 [1] : vector<2x32xf32> to vector<2xf32>
    %97 = vector.shape_cast %96 : vector<2xf32> to vector<2x1xf32>
    %c4_i32_35 = arith.constant 4 : i32
    %98 = vector.broadcast %c4_i32_35 : i32 to vector<2x1xi32>
    %99 = arith.muli %9, %98 : vector<2x1xi32>
    %c2_i32_36 = arith.constant 2 : i32
    %100 = vector.broadcast %c2_i32_36 : i32 to vector<2x1xi32>
    %101 = arith.addi %99, %100 : vector<2x1xi32>
    %102 = vector.extract_strided_slice %3 {offsets = [0, 2], sizes = [2, 1], strides = [1, 1]} : vector<2x4xf32> to vector<2x1xf32>
    %103 = math.sqrt %94 : vector<2x1xf32>
    %104 = math.sqrt %97 : vector<2x1xf32>
    %105 = arith.mulf %103, %104 : vector<2x1xf32>
    %cst_37 = arith.constant 9.99999993E-9 : f32
    %106 = vector.broadcast %cst_37 : f32 to vector<2x1xf32>
    %107 = arith.maximumf %105, %106 : vector<2x1xf32>
    %108 = arith.divf %91, %107 : vector<2x1xf32>
    %cst_38 = arith.constant 1.000000e+00 : f32
    %109 = vector.broadcast %cst_38 : f32 to vector<2x1xf32>
    %110 = arith.addf %108, %109 : vector<2x1xf32>
    %cst_39 = arith.constant 5.000000e-01 : f32
    %111 = vector.broadcast %cst_39 : f32 to vector<2x1xf32>
    %112 = arith.mulf %110, %111 : vector<2x1xf32>
    %113 = arith.subf %112, %102 : vector<2x1xf32>
    %c8_i32_40 = arith.constant 8 : i32
    %114 = vector.broadcast %c8_i32_40 : i32 to vector<2x1xi32>
    %115 = arith.cmpi slt, %101, %114 : vector<2x1xi32>
    %116 = arith.mulf %113, %113 : vector<2x1xf32>
    %cst_41 = arith.constant 0.000000e+00 : f32
    %117 = vector.broadcast %cst_41 : f32 to vector<2x1xf32>
    %118 = arith.select %115, %116, %117 : vector<2x1xi1>, vector<2x1xf32>
    %119 = vector.shape_cast %118 : vector<2x1xf32> to vector<1x2x1xf32>
    %cst_42 = arith.constant dense<0.000000e+00> : vector<1xf32>
    %120 = vector.multi_reduction <add>, %119, %cst_42 [1, 2] : vector<1x2x1xf32> to vector<1xf32>
    %121 = vector.shape_cast %120 : vector<1xf32> to vector<1x1x1xf32>
    %122 = vector.extract %121[0, 0, 0] : f32 from vector<1x1x1xf32>
    %123 = vector.broadcast %122 : f32 to vector<1x1xf32>
    %124 = arith.addf %86, %123 : vector<1x1xf32>
    %c0_43 = arith.constant 0 : index
    %c96 = arith.constant 96 : index
    %125 = vector.load %arg2[%c0_43, %c96] : memref<2x128xf32, #tpu.memory_space<vmem>>, vector<2x32xf32>
    %c0_44 = arith.constant 0 : index
    %c96_45 = arith.constant 96 : index
    %126 = vector.load %arg3[%c0_44, %c96_45] : memref<2x128xf32, #tpu.memory_space<vmem>>, vector<2x32xf32>
    %127 = arith.mulf %125, %126 : vector<2x32xf32>
    %cst_46 = arith.constant dense<0.000000e+00> : vector<2xf32>
    %128 = vector.multi_reduction <add>, %127, %cst_46 [1] : vector<2x32xf32> to vector<2xf32>
    %129 = vector.shape_cast %128 : vector<2xf32> to vector<2x1xf32>
    %130 = arith.mulf %125, %125 : vector<2x32xf32>
    %cst_47 = arith.constant dense<0.000000e+00> : vector<2xf32>
    %131 = vector.multi_reduction <add>, %130, %cst_47 [1] : vector<2x32xf32> to vector<2xf32>
    %132 = vector.shape_cast %131 : vector<2xf32> to vector<2x1xf32>
    %133 = arith.mulf %126, %126 : vector<2x32xf32>
    %cst_48 = arith.constant dense<0.000000e+00> : vector<2xf32>
    %134 = vector.multi_reduction <add>, %133, %cst_48 [1] : vector<2x32xf32> to vector<2xf32>
    %135 = vector.shape_cast %134 : vector<2xf32> to vector<2x1xf32>
    %c4_i32_49 = arith.constant 4 : i32
    %136 = vector.broadcast %c4_i32_49 : i32 to vector<2x1xi32>
    %137 = arith.muli %9, %136 : vector<2x1xi32>
    %c3_i32 = arith.constant 3 : i32
    %138 = vector.broadcast %c3_i32 : i32 to vector<2x1xi32>
    %139 = arith.addi %137, %138 : vector<2x1xi32>
    %140 = vector.extract_strided_slice %3 {offsets = [0, 3], sizes = [2, 1], strides = [1, 1]} : vector<2x4xf32> to vector<2x1xf32>
    %141 = math.sqrt %132 : vector<2x1xf32>
    %142 = math.sqrt %135 : vector<2x1xf32>
    %143 = arith.mulf %141, %142 : vector<2x1xf32>
    %cst_50 = arith.constant 9.99999993E-9 : f32
    %144 = vector.broadcast %cst_50 : f32 to vector<2x1xf32>
    %145 = arith.maximumf %143, %144 : vector<2x1xf32>
    %146 = arith.divf %129, %145 : vector<2x1xf32>
    %cst_51 = arith.constant 1.000000e+00 : f32
    %147 = vector.broadcast %cst_51 : f32 to vector<2x1xf32>
    %148 = arith.addf %146, %147 : vector<2x1xf32>
    %cst_52 = arith.constant 5.000000e-01 : f32
    %149 = vector.broadcast %cst_52 : f32 to vector<2x1xf32>
    %150 = arith.mulf %148, %149 : vector<2x1xf32>
    %151 = arith.subf %150, %140 : vector<2x1xf32>
    %c8_i32_53 = arith.constant 8 : i32
    %152 = vector.broadcast %c8_i32_53 : i32 to vector<2x1xi32>
    %153 = arith.cmpi slt, %139, %152 : vector<2x1xi32>
    %154 = arith.mulf %151, %151 : vector<2x1xf32>
    %cst_54 = arith.constant 0.000000e+00 : f32
    %155 = vector.broadcast %cst_54 : f32 to vector<2x1xf32>
    %156 = arith.select %153, %154, %155 : vector<2x1xi1>, vector<2x1xf32>
    %157 = vector.shape_cast %156 : vector<2x1xf32> to vector<1x2x1xf32>
    %cst_55 = arith.constant dense<0.000000e+00> : vector<1xf32>
    %158 = vector.multi_reduction <add>, %157, %cst_55 [1, 2] : vector<1x2x1xf32> to vector<1xf32>
    %159 = vector.shape_cast %158 : vector<1xf32> to vector<1x1x1xf32>
    %160 = vector.extract %159[0, 0, 0] : f32 from vector<1x1x1xf32>
    %161 = vector.broadcast %160 : f32 to vector<1x1xf32>
    %162 = arith.addf %124, %161 : vector<1x1xf32>
    %c0_56 = arith.constant 0 : index
    %c0_57 = arith.constant 0 : index
    %163 = vector.load %arg6[%c0_56, %c0_57] : memref<1x1xf32, #tpu.memory_space<vmem>>, vector<1x1xf32>
    %164 = arith.addf %163, %162 : vector<1x1xf32>
    %c0_58 = arith.constant 0 : index
    %c0_59 = arith.constant 0 : index
    %165 = vector.load %arg6[%c0_58, %c0_59] : memref<1x1xf32, #tpu.memory_space<vmem>>, vector<1x1xf32>
    tpu.vector_store %arg6[%c0_58, %c0_59], %164 {strides = array<i32>} : memref<1x1xf32, #tpu.memory_space<vmem>>, vector<1x1xf32>,
    %c0_i32_60 = arith.constant 0 : i32
    %166 = arith.cmpi eq, %arg1, %c0_i32_60 : i32
    %167 = arith.extui %166 : i1 to i32
    %c0_i32_61 = arith.constant 0 : i32
    %168 = arith.cmpi ne, %167, %c0_i32_61 : i32
    scf.if %168 {
      %c0_62 = arith.constant 0 : index
      %c0_63 = arith.constant 0 : index
      %169 = vector.load %arg6[%c0_62, %c0_63] : memref<1x1xf32, #tpu.memory_space<vmem>>, vector<1x1xf32>
      %c0_64 = arith.constant 0 : index
      %c0_65 = arith.constant 0 : index
      %c0_66 = arith.constant 0 : index
      %170 = vector.load %arg5[%c0_64, %c0_65, %c0_66] : memref<1x1x1xf32, #tpu.memory_space<vmem>>, vector<1x1x1xf32>
      %171 = vector.shape_cast %170 : vector<1x1x1xf32> to vector<1x1xf32>
      %172 = vector.shape_cast %169 : vector<1x1xf32> to vector<1x1x1xf32>
      tpu.vector_store %arg5[%c0_64, %c0_65, %c0_66], %172 {strides = array<i32>} : memref<1x1x1xf32, #tpu.memory_space<vmem>>, vector<1x1x1xf32>,
    } else {
    }
    return
  }
  func.func @transform_0(%arg0: i32, %arg1: i32) -> (i32, i32) {
    %c1_i32 = arith.constant 1 : i32
    %0 = arith.muli %arg0, %c1_i32 : i32
    %1 = arith.addi %0, %arg1 : i32
    %c0_i32 = arith.constant 0 : i32
    %2 = arith.minsi %1, %c0_i32 : i32
    %c0_i32_0 = arith.constant 0 : i32
    %c0_i32_1 = arith.constant 0 : i32
    return %2, %c0_i32_0 : i32, i32
  }
  func.func @transform_1(%arg0: i32, %arg1: i32) -> (i32, i32) {
    %c1_i32 = arith.constant 1 : i32
    %0 = arith.muli %arg0, %c1_i32 : i32
    %1 = arith.addi %0, %arg1 : i32
    %c0_i32 = arith.constant 0 : i32
    %2 = arith.minsi %1, %c0_i32 : i32
    %c0_i32_0 = arith.constant 0 : i32
    %c0_i32_1 = arith.constant 0 : i32
    return %2, %c0_i32_0 : i32, i32
  }
  func.func @transform_2(%arg0: i32, %arg1: i32) -> (i32, i32) {
    %c1_i32 = arith.constant 1 : i32
    %0 = arith.muli %arg0, %c1_i32 : i32
    %1 = arith.addi %0, %arg1 : i32
    %c0_i32 = arith.constant 0 : i32
    %2 = arith.minsi %1, %c0_i32 : i32
    %c0_i32_0 = arith.constant 0 : i32
    %c0_i32_1 = arith.constant 0 : i32
    return %2, %c0_i32_0 : i32, i32
  }
  func.func @transform_3(%arg0: i32, %arg1: i32) -> (i32, i32, i32) {
    %c0_i32 = arith.constant 0 : i32
    %c0_i32_0 = arith.constant 0 : i32
    %c0_i32_1 = arith.constant 0 : i32
    return %arg0, %c0_i32, %c0_i32_0 : i32, i32, i32
  }
}

</mosaic_0001>

<bundles_post_ra>
// kernel: tpu_custom_call.1
= control target key start
LH: loop header
LB: loop body
LE: loop exit
PB: predicated region body
PF: predicated region fallthrough
CT: control target
= control target key end

     0   :  { %8 = vsyncpa [#allocation4], 0  ;;  %s557_s0 = inlined_call_operand.hbm [shape: f32[2,128], index: 0, kind: input, shape index: {}]   ;;  %s558_s1 = inlined_call_operand.hbm [shape: f32[2,128], index: 1, kind: input, shape index: {}]   ;;  %s559_s2 = inlined_call_operand.vmem [shape: f32[2,4], index: 2, kind: input, shape index: {}]   ;;  %s560_s3 = inlined_call_operand.hbm [shape: f32[1,1,1], index: 3, kind: output, shape index: {}]  }
   0x1   :  { %9 = vsyncpa [#allocation7], 0 }
   0x2   :  { %10 = vsyncpa [#allocation5], 0  ;;  %s471_s12 = smov [#allocation3]   ;;  %s472_s14 = smov [#allocation6]  }
   0x3   :  { %s22_s13 = sshll.u32 %s471_s12, 4  ;;  %s37_s15 = sshll.u32 %s472_s14, 4  ;;  %s23_s13 = int_to_ptr.vmem [resolvable:$true] %s22_s13  ;;  %s38_s15 = int_to_ptr.vmem [resolvable:$true] %s37_s15 }
   0x4   :  { %s413_s16 = scalar_lea.vmem %s23_s13, 32  ;;  %p418_p1 = scmp.lt.s32.totalorder %s23_s13, %s23_s13 }
   0x5   :  { %p414_p0 = scmp.ne.s32.totalorder %s23_s13, %s413_s16  ;;  %p419_p2 = scmp.lt.s32.totalorder %s413_s16, %s413_s16 }
   0x7   :  { %p420_p3 = por %p419_p2, %p418_p1 }
   0x9   :  { %p421_p4 = pnand %p420_p3, %p414_p0 }
   0xb   :  { %424 = shalt.err (!%p421_p4)
}
   0xc   :  { %25 = dma.hbm_to_vmem [thread:$0]  %s557_s0, 32, %s23_s13, [#allocation4]  }
   0xd   :  { %s433_s19 = scalar_lea.vmem %s38_s15, 32  ;;  %p438_p6 = scmp.lt.s32.totalorder %s38_s15, %s38_s15 }
   0xe   :  { %p434_p5 = scmp.ne.s32.totalorder %s38_s15, %s433_s19  ;;  %p439_p7 = scmp.lt.s32.totalorder %s433_s19, %s433_s19 }
  0x10   :  { %p440_p8 = por %p439_p7, %p438_p6 }
  0x12   :  { %p441_p9 = pnand %p440_p8, %p434_p5 }
  0x14   :  { %444 = shalt.err (!%p441_p9)
}
  0x15   :  { %40 = dma.hbm_to_vmem [thread:$0]  %s558_s1, 32, %s38_s15, [#allocation7]  }
  0x16   :  { %465 = dma.done.wait [#allocation4], 32  }
  0x17   :  { %466 = vsyncadd [#allocation4], 4294967264 }
  0x18   :  { %467 = dma.done.wait [#allocation7], 32  }
  0x19   :  { %468 = vsyncadd [#allocation7], 4294967264  ;;  %v95_v0 = vld [vmem:[#allocation3] sm:$0x3]  ;;  %v96_v1 = vld [vmem:[#allocation6] sm:$0x3]  ;;  %v91_v61 = vlaneseq }
  0x1a   :  { %v102_v2 = vmul.f32 %v95_v0, %v95_v0  ;;  %s473_s22 = smov 64   ;;  %s474_s0 = smov 96   ;;  %v106_v3 = vmul.f32 %v96_v1, %v96_v1  ;;  %v97_v4 = vmul.f32 %v96_v1, %v95_v0  ;;  %vm98_vm0 = vcmask 254976  }
  0x1b   :  { %s475_s23 = smov 32   ;;  %s476_s25 = smov 127  }
  0x1c   :  { %216 = vrot.lane.b32.xlu1 %v102_v2, %s473_s22  ;;  %156 = vrot.lane.b32.xlu0 %v102_v2, %s474_s0  ;;  %v99_v21 = vsel %vm98_vm0, %v97_v4, 0.0  ;;  %v103_v22 = vsel %vm98_vm0, %v102_v2, 0.0  ;;  %v107_v23 = vsel %vm98_vm0, %v106_v3, 0.0  ;;  %s478_s26 = smov 125   ;;  %s480_s4 = smov [#allocation8]  }
  0x1d   :  { %s343_s5 = sshll.u32 %s480_s4, 4  ;;  %s344_s5 = int_to_ptr.vmem [resolvable:$true] %s343_s5 }
  0x1e   :  { %s445_s6 = scalar_lea.vmem %s344_s5, 16  ;;  %s449_s7 = scalar_lea.vmem %s344_s5, 32 }
  0x1f   :  { %p446_p10 = scmp.ne.s32.totalorder %s344_s5, %s445_s6  ;;  %p450_p11 = scmp.lt.s32.totalorder %s344_s5, %s344_s5 }
  0x20   :  { %222 = vrot.lane.b32.xlu1 %v106_v3, %s473_s22  ;;  %163 = vrot.lane.b32.xlu0 %v106_v3, %s474_s0  ;;  %p451_p12 = scmp.lt.s32.totalorder %s449_s7, %s445_s6 }
  0x22   :  { %p452_p13 = por %p451_p12, %p450_p11 }
  0x24   :  { %281 = vrot.lane.b32.xlu1 %v106_v3, %s475_s23  ;;  %275 = vrot.lane.b32.xlu0 %v102_v2, %s475_s23  ;;  %p453_p0 = pnand %p452_p13, %p446_p10 }
  0x28   :  { %210 = vrot.lane.b32.xlu1 %v97_v4, %s473_s22  ;;  %149 = vrot.lane.b32.xlu0 %v97_v4, %s474_s0 }
  0x2c   :  { %269 = vrot.lane.b32.xlu0 %v97_v4, %s475_s23 }
  0x8e   :  { %v217_v5 = vpop.permute.xlu1 %216  ;;  %v157_v6 = vpop.permute.xlu0 %156 }
  0x8f   :  { %v159_v7 = vsel %vm98_vm0, %v157_v6, 0.0  ;;  %v219_v12 = vsel %vm98_vm0, %v217_v5, 0.0  ;;  %v92_v6 = vshrl.u32 %v91_v61, 7 }
  0x90   :  { %160 = vadd.xlane.f32.xlu1 %v159_v7 }
  0x92   :  { %v223_v8 = vpop.permute.xlu1 %222  ;;  %v164_v9 = vpop.permute.xlu0 %163 }
  0x93   :  { %v225_v10 = vsel %vm98_vm0, %v223_v8, 0.0  ;;  %v166_v11 = vsel %vm98_vm0, %v164_v9, 0.0 }
  0x94   :  { %226 = vadd.xlane.f32.xlu1 %v225_v10  ;;  %167 = vadd.xlane.f32.xlu0 %v166_v11 }
  0x96   :  { %v282_v13 = vpop.permute.xlu1 %281  ;;  %v276_v14 = vpop.permute.xlu0 %275 }
  0x97   :  { %v284_v15 = vsel %vm98_vm0, %v282_v13, 0.0  ;;  %v278_v16 = vsel %vm98_vm0, %v276_v14, 0.0 }
  0x98   :  { %285 = vadd.xlane.f32.xlu1 %v284_v15  ;;  %220 = vadd.xlane.f32.xlu0 %v219_v12 }
  0x9a   :  { %v211_v17 = vpop.permute.xlu1 %210  ;;  %v150_v18 = vpop.permute.xlu0 %149 }
  0x9b   :  { %v213_v19 = vsel %vm98_vm0, %v211_v17, 0.0  ;;  %v152_v20 = vsel %vm98_vm0, %v150_v18, 0.0 }
  0x9c   :  { %214 = vadd.xlane.f32.xlu1 %v213_v19  ;;  %279 = vadd.xlane.f32.xlu0 %v278_v16  ;;  %v110_v16 = vmul.u32 4, %v92_v6 }
  0x9e   :  { %v270_v24 = vpop.permute.xlu0 %269 }
  0x9f   :  { %v272_v25 = vsel %vm98_vm0, %v270_v24, 0.0 }
  0xa0   :  { %153 = vadd.xlane.f32.xlu0 %v152_v20  ;;  %100 = vadd.xlane.f32.xlu1 %v99_v21 }
  0xa4   :  { %104 = vadd.xlane.f32.xlu0 %v103_v22  ;;  %108 = vadd.xlane.f32.xlu1 %v107_v23 }
  0xa8   :  { %273 = vadd.xlane.f32.xlu0 %v272_v25  ;;  %v88_v25 = vld [vmem:[%s559_s2] sm:$0x3]  ;;  %s477_s2 = smov 126  }
 0x119   :  { %v161_v26 = vpop.xlane.xlu1 %160 }
 0x11a   :  { %381 = vrsqrt.f32 %v161_v26  ;;  %vm172_vm1 = vcmp.eq.f32.partialorder %v161_v26, inf  ;;  %vm174_vm2 = vcmp.eq.f32.partialorder %v161_v26, 0.0  ;;  %v175_v42 = vand.u32 2147483648, %v161_v26 }
 0x11d   :  { %v519_v27 = vpop.xlane.xlu1 %226  ;;  %v168_v28 = vpop.xlane.xlu0 %167 }
 0x11e   :  { %383 = vrsqrt.f32 %v168_v28  ;;  %vm179_vm3 = vcmp.eq.f32.partialorder %v168_v28, inf  ;;  %v182_v43 = vand.u32 2147483648, %v168_v28  ;;  %vm181_vm4 = vcmp.eq.f32.partialorder %v168_v28, 0.0 }
 0x11f   :  { %vm238_vm13 = vcmp.eq.f32.partialorder %v519_v27, inf  ;;  %v241_v13 = vand.u32 2147483648, %v519_v27  ;;  %vm240_vm15 = vcmp.eq.f32.partialorder %v519_v27, 0.0 }
 0x121   :  { %v286_v29 = vpop.xlane.xlu1 %285  ;;  %v521_v30 = vpop.xlane.xlu0 %220 }
 0x122   :  { %385 = vrsqrt.f32 %v286_v29  ;;  %vm297_vm5 = vcmp.eq.f32.partialorder %v286_v29, inf  ;;  %v300_v50 = vand.u32 2147483648, %v286_v29  ;;  %vm299_vm6 = vcmp.eq.f32.partialorder %v286_v29, 0.0 }
 0x123   :  { %vm231_vm14 = vcmp.eq.f32.partialorder %v521_v30, inf  ;;  %v234_v14 = vand.u32 2147483648, %v521_v30  ;;  %vm233_vm0 = vcmp.eq.f32.partialorder %v521_v30, 0.0 }
 0x125   :  { %v523_v31 = vpop.xlane.xlu1 %214  ;;  %v280_v32 = vpop.xlane.xlu0 %279 }
 0x126   :  { %387 = vrsqrt.f32 %v280_v32  ;;  %vm290_vm7 = vcmp.eq.f32.partialorder %v280_v32, inf  ;;  %v293_v53 = vand.u32 2147483648, %v280_v32  ;;  %vm292_vm8 = vcmp.eq.f32.partialorder %v280_v32, 0.0 }
 0x127   :  { %v382_v33 = vpop.eup %381  ;;  %389 = vrsqrt.f32 %v519_v27 }
 0x128   :  { %v171_v34 = vmul.f32 %v382_v33, %v161_v26  ;;  %391 = vrsqrt.f32 %v521_v30 }
 0x129   :  { %v525_v35 = vpop.xlane.xlu0 %153  ;;  %v527_v36 = vpop.xlane.xlu1 %100 }
 0x12a   :  { %v173_v38 = vsel %vm172_vm1, %v161_v26, %v171_v34  ;;  %v169_v26 = vadd.s32 1, %v110_v16 }
 0x12b   :  { %v384_v37 = vpop.eup %383  ;;  %v176_v46 = vsel %vm174_vm2, %v175_v42, %v173_v38 }
 0x12c   :  { %v178_v39 = vmul.f32 %v384_v37, %v168_v28  ;;  %vm191_vm1 = vcmp.lt.s32.totalorder %v169_v26, 8 }
 0x12d   :  { %v105_v40 = vpop.xlane.xlu0 %104  ;;  %v109_v41 = vpop.xlane.xlu1 %108 }
 0x12e   :  { %393 = vrsqrt.f32 %v105_v40  ;;  %v180_v45 = vsel %vm179_vm3, %v168_v28, %v178_v39  ;;  %vm113_vm9 = vcmp.eq.f32.partialorder %v105_v40, inf  ;;  %vm115_vm10 = vcmp.eq.f32.partialorder %v105_v40, 0.0 }
 0x12f   :  { %v386_v44 = vpop.eup %385  ;;  %395 = vrsqrt.f32 %v109_v41  ;;  %v183_v47 = vsel %vm181_vm4, %v182_v43, %v180_v45  ;;  %v116_v1 = vand.u32 2147483648, %v105_v40  ;;  %vm120_vm11 = vcmp.eq.f32.partialorder %v109_v41, inf }
 0x130   :  { %v296_v48 = vmul.f32 %v386_v44, %v286_v29  ;;  %v184_v49 = vmul.f32 %v183_v47, %v176_v46  ;;  %v123_v4 = vand.u32 2147483648, %v109_v41  ;;  %vm122_vm12 = vcmp.eq.f32.partialorder %v109_v41, 0.0 }
 0x131   :  { %v287_v39 = vadd.s32 3, %v110_v16  ;;  %vm132_vm3 = vcmp.lt.s32.totalorder %v110_v16, 8  ;;  %vm135_vm4 = vcmask 1024  }
 0x132   :  { %v298_v51 = vsel %vm297_vm5, %v286_v29, %v296_v48  ;;  %v185_v54 = vmax.f32 %v184_v49, 1e-08  ;;  %v274_v29 = vpop.xlane.xlu0 %273 }
 0x133   :  { %v388_v52 = vpop.eup %387  ;;  %v301_v56 = vsel %vm299_vm6, %v300_v50, %v298_v51  ;;  %vm309_vm2 = vcmp.lt.s32.totalorder %v287_v39, 8  ;;  %vm86_vm6 = vcmask 0  }
 0x134   :  { %v289_v55 = vmul.f32 %v388_v52, %v280_v32  ;;  %397 = vrcp.f32 %v185_v54  ;;  %v390_v60 = vpop.eup %389 }
 0x135   :  { %v392_v62 = vpop.eup %391  ;;  %v237_v7 = vmul.f32 %v390_v60, %v519_v27 }
 0x136   :  { %v291_v57 = vsel %vm290_vm7, %v280_v32, %v289_v55  ;;  %v230_v8 = vmul.f32 %v392_v62, %v521_v30 }
 0x137   :  { %v294_v58 = vsel %vm292_vm8, %v293_v53, %v291_v57  ;;  %v239_v18 = vsel %vm238_vm13, %v519_v27, %v237_v7  ;;  %v228_v57 = vadd.s32 2, %v110_v16 }
 0x138   :  { %v302_v59 = vmul.f32 %v301_v56, %v294_v58  ;;  %v232_v19 = vsel %vm231_vm14, %v521_v30, %v230_v8  ;;  %v242_v22 = vsel %vm240_vm15, %v241_v13, %v239_v18 }
 0x139   :  { %v235_v23 = vsel %vm233_vm0, %v234_v14, %v232_v19  ;;  %vm250_vm5 = vcmp.lt.s32.totalorder %v228_v57, 8  ;;  %v479_v14 = vmov 0.0  }
 0x13a   :  { %v303_v63 = vmax.f32 %v302_v59, 1e-08  ;;  %v243_v32 = vmul.f32 %v242_v22, %v235_v23  ;;  %87 = vst.msk [vmem:[#allocation2] sm:$0x1] %vm86_vm6, %v479_v14 }
 0x13b   :  { %v394_v0 = vpop.eup %393 }
 0x13c   :  { %v396_v2 = vpop.eup %395  ;;  %v112_v3 = vmul.f32 %v394_v0, %v105_v40  ;;  %399 = vrcp.f32 %v303_v63  ;;  %v244_v37 = vmax.f32 %v243_v32, 1e-08 }
 0x13d   :  { %v119_v5 = vmul.f32 %v396_v2, %v109_v41 }
 0x13e   :  { %v114_v9 = vsel %vm113_vm9, %v105_v40, %v112_v3 }
 0x13f   :  { %v117_v10 = vsel %vm115_vm10, %v116_v1, %v114_v9  ;;  %v121_v11 = vsel %vm120_vm11, %v109_v41, %v119_v5 }
 0x140   :  { %v124_v12 = vsel %vm122_vm12, %v123_v4, %v121_v11 }
 0x141   :  { %v125_v15 = vmul.f32 %v124_v12, %v117_v10  ;;  %v398_v17 = vpop.eup %397 }
 0x142   :  { %v187_v20 = vmul.f32 %v398_v17, %v525_v35 }
 0x143   :  { %v126_v21 = vmax.f32 %v125_v15, 1e-08 }
 0x144   :  { %v188_v24 = vadd.f32 1.0, %v187_v20 }
 0x145   :  { %401 = vrcp.f32 %v126_v21 }
 0x146   :  { %v189_v28 = vmul.f32 0.5, %v188_v24  ;;  %403 = vrcp.f32 %v244_v37 }
 0x148   :  { %v190_v33 = vsub.f32 %v189_v28, %v88_v25 }
 0x149   :  { %v400_v27 = vpop.eup %399 }
 0x14a   :  { %v305_v34 = vmul.f32 %v400_v27, %v274_v29  ;;  %v192_v30 = vmul.f32 %v190_v33, %v190_v33 }
 0x14c   :  { %v306_v35 = vadd.f32 1.0, %v305_v34  ;;  %v193_v38 = vsel %vm191_vm1, %v192_v30, 0.0 }
 0x14d   :  { %195 = vrot.lane.b32.xlu1 %v193_v38, %s476_s25 }
 0x14e   :  { %v307_v40 = vmul.f32 0.5, %v306_v35  ;;  %v328_v35 = vld [vmem:[#allocation2] sm:$0x1] }
 0x150   :  { %v308_v41 = vsub.f32 %v307_v40, %v88_v25 }
 0x152   :  { %v402_v42 = vpop.eup %401  ;;  %v310_v43 = vmul.f32 %v308_v41, %v308_v41 }
 0x153   :  { %v128_v44 = vmul.f32 %v402_v42, %v527_v36  ;;  %v404_v50 = vpop.eup %403 }
 0x154   :  { %v311_v45 = vsel %vm309_vm2, %v310_v43, 0.0  ;;  %v246_v53 = vmul.f32 %v404_v50, %v523_v31 }
 0x155   :  { %v129_v46 = vadd.f32 1.0, %v128_v44 }
 0x156   :  { %v247_v54 = vadd.f32 1.0, %v246_v53 }
 0x157   :  { %v130_v47 = vmul.f32 0.5, %v129_v46 }
 0x158   :  { %v248_v55 = vmul.f32 0.5, %v247_v54 }
 0x159   :  { %v131_v48 = vsub.f32 %v130_v47, %v88_v25 }
 0x15a   :  { %v249_v56 = vsub.f32 %v248_v55, %v88_v25 }
 0x15b   :  { %v133_v49 = vmul.f32 %v131_v48, %v131_v48 }
 0x15c   :  { %v251_v58 = vmul.f32 %v249_v56, %v249_v56 }
 0x15d   :  { %v134_v51 = vsel %vm132_vm3, %v133_v49, 0.0 }
 0x15e   :  { %v136_v52 = vsel %vm135_vm4, %v134_v51, 0.0  ;;  %v252_v36 = vsel %vm250_vm5, %v251_v58, 0.0 }
 0x15f   :  { %137 = vadd.xlane.f32.xlu0 %v136_v52 }
 0x175   :  { %254 = vrot.lane.b32.xlu0 %v252_v36, %s477_s2 }
 0x1bf   :  { %v196_v59 = vpop.permute.xlu1 %195 }
 0x1c0   :  { %v198_v60 = vsel %vm135_vm4, %v196_v59, 0.0 }
 0x1c1   :  { %199 = vadd.xlane.f32.xlu0 %v198_v60 }
 0x1d7   :  { %313 = vrot.lane.b32.xlu0 %v311_v45, %s478_s26 }
 0x1e8   :  { %v138_v61 = vpop.xlane.xlu0 %137 }
 0x1e9   :  { %v139_v62 = vrot.slane %v138_v61, 4 }
 0x1eb   :  { %v140_v63 = vadd.f32 %v139_v62, %v138_v61 }
 0x1ec   :  { %v255_v0 = vpop.permute.xlu0 %254 }
 0x1ed   :  { %v141_v31 = vrot.slane %v140_v63, 2  ;;  %v257_v1 = vsel %vm135_vm4, %v255_v0, 0.0 }
 0x1ee   :  { %258 = vadd.xlane.f32.xlu1 %v257_v1 }
 0x1ef   :  { %v142_v2 = vadd.f32 %v141_v31, %v140_v63 }
 0x1f1   :  { %v143_v3 = vrot.slane %v142_v2, 1 }
 0x1f3   :  { %v144_v4 = vadd.f32 %v143_v3, %v142_v2 }
 0x1f5   :  { %363 = vpush %v144_v4 }
 0x226   :  { %s364_s27 = spop %363 }
 0x227   :  { %v146_v27 = vstv %s364_s27 }
 0x24a   :  { %v200_v5 = vpop.xlane.xlu0 %199 }
 0x24b   :  { %v201_v6 = vrot.slane %v200_v5, 4 }
 0x24d   :  { %v202_v7 = vadd.f32 %v201_v6, %v200_v5 }
 0x24e   :  { %v314_v8 = vpop.permute.xlu0 %313 }
 0x24f   :  { %v203_v9 = vrot.slane %v202_v7, 2  ;;  %v316_v10 = vsel %vm135_vm4, %v314_v8, 0.0 }
 0x250   :  { %317 = vadd.xlane.f32.xlu0 %v316_v10 }
 0x251   :  { %v204_v11 = vadd.f32 %v203_v9, %v202_v7 }
 0x253   :  { %v205_v12 = vrot.slane %v204_v11, 1 }
 0x255   :  { %v206_v13 = vadd.f32 %v205_v12, %v204_v11 }
 0x257   :  { %365 = vpush %v206_v13 }
 0x277   :  { %v259_v15 = vpop.xlane.xlu1 %258 }
 0x278   :  { %v260_v16 = vrot.slane %v259_v15, 4 }
 0x27a   :  { %v261_v17 = vadd.f32 %v260_v16, %v259_v15 }
 0x27c   :  { %v262_v18 = vrot.slane %v261_v17, 2 }
 0x27e   :  { %v263_v19 = vadd.f32 %v262_v18, %v261_v17 }
 0x280   :  { %v264_v20 = vrot.slane %v263_v19, 1 }
 0x282   :  { %v265_v21 = vadd.f32 %v264_v20, %v263_v19 }
 0x284   :  { %367 = vpush %v265_v21 }
 0x288   :  { %s366_s28 = spop %365 }
 0x289   :  { %v208_v32 = vstv %s366_s28 }
 0x28a   :  { %v209_v34 = vadd.f32 %v208_v32, %v146_v27 }
 0x2b5   :  { %s368_s29 = spop %367 }
 0x2b6   :  { %v267_v33 = vstv %s368_s29 }
 0x2b7   :  { %v268_v30 = vadd.f32 %v267_v33, %v209_v34 }
 0x2d9   :  { %v318_v22 = vpop.xlane.xlu0 %317 }
 0x2da   :  { %v319_v23 = vrot.slane %v318_v22, 4 }
 0x2dc   :  { %v320_v24 = vadd.f32 %v319_v23, %v318_v22 }
 0x2de   :  { %v321_v25 = vrot.slane %v320_v24, 2 }
 0x2e0   :  { %v322_v26 = vadd.f32 %v321_v25, %v320_v24 }
 0x2e2   :  { %v323_v28 = vrot.slane %v322_v26, 1 }
 0x2e4   :  { %v324_v29 = vadd.f32 %v323_v28, %v322_v26 }
 0x2e6   :  { %369 = vpush %v324_v29 }
 0x317   :  { %s370_s30 = spop %369 }
 0x318   :  { %v326_v37 = vstv %s370_s30 }
 0x319   :  { %v327_v38 = vadd.f32 %v326_v37, %v268_v30 }
 0x31b   :  { %v329_v39 = vadd.f32 %v328_v35, %v327_v38 }
 0x31d   :  { %331 = vst.msk [vmem:[#allocation2] sm:$0x1] %vm86_vm6, %v329_v39 }
 0x324   :  { %v335_v40 = vld [vmem:[#allocation2] sm:$0x1] }
 0x325   :  { %336 = vst.msk [vmem:[#allocation8] sm:$0x1] %vm86_vm6, %v335_v40 }
 0x326   :  { %456 = shalt.err (!%p453_p0)
}
 0x327   :  { %346 = dma.vmem_to_hbm [thread:$0]  %s344_s5, 16, %s560_s3, [#allocation5]  }
 0x328   :  { %469 = dma.done.wait [#allocation5], 16  }
 0x329   :  { %470 = vsyncadd [#allocation5], 4294967280 }
 0x32a   :  { %350 = vsyncpa [#allocation4], 1 }
 0x32b   :  { %351 = vsyncpa [#allocation7], 1 }
 0x32c   :  { %352 = vsyncpa [#allocation5], 1 }

</bundles_post_ra>
